<compile_context>
chip_gen: v5e
topology: v5e:2x2
jax: 0.10.0
libtpu: 0.0.40
codegen_flags: <defaults>
</compile_context>

<pallas_src>
import functools

import jax
import jax.numpy as jnp
from jax.experimental import pallas as pl
from jax.experimental.pallas import tpu as pltpu


def _linear_kernel_single_k(x_ref, w_ref, b_ref, o_ref):
    # Whole contraction in one tile: no scratch, fused bias add, direct store.
    # x_ref: [tm, K], w_ref: [tn, K] (PyTorch [out, in] tile), b_ref: [1, tn]
    acc = jax.lax.dot_general(
        x_ref[...],
        w_ref[...],
        dimension_numbers=(((1,), (1,)), ((), ())),
        preferred_element_type=jnp.float32,
    )
    o_ref[...] = (acc + b_ref[...]).astype(o_ref.dtype)


def _linear_kernel_acc(x_ref, w_ref, b_ref, o_ref, acc_ref):
    # General K-tiled path with an f32 VMEM accumulator resident across K.
    k = pl.program_id(2)

    @pl.when(k == 0)
    def _init():
        acc_ref[...] = jnp.zeros_like(acc_ref)

    acc_ref[...] += jax.lax.dot_general(
        x_ref[...],
        w_ref[...],
        dimension_numbers=(((1,), (1,)), ((), ())),
        preferred_element_type=jnp.float32,
    )

    @pl.when(k == pl.num_programs(2) - 1)
    def _finalize():
        o_ref[...] = (acc_ref[...] + b_ref[...]).astype(o_ref.dtype)


def _round_up(v, m):
    return ((v + m - 1) // m) * m


@functools.partial(jax.jit, static_argnames=("tm", "tn", "tk"))
def testnet_forward(x, weight, bias, *, tm=None, tn=None, tk=None):
    """y = x @ weight.T + bias  (torch.nn.Linear semantics, any leading dims).

    x:      [..., in_dim]
    weight: [out_dim, in_dim]   (PyTorch layout)
    bias:   [out_dim]
    """
    lead_shape = x.shape[:-1]
    in_dim = x.shape[-1]
    out_dim = weight.shape[0]

    x2 = x.reshape(-1, in_dim)
    B = x2.shape[0]

    # --- pad to lane/sublane-friendly shapes (lane-dense N/K) -------------
    Mp = _round_up(max(B, 1), 8)     # sublane alignment
    Kp = _round_up(in_dim, 128)      # lane-dense contraction dim
    Np = _round_up(out_dim, 128)     # lane-dense output dim (unmasked vst)

    # --- tile sizes: multiples of (8,128), sized for v7x's 64 MiB VMEM ----
    if tm is None:
        tm = min(Mp, 256)
    if tn is None:
        tn = min(Np, 512)
    if tk is None:
        tk = min(Kp, 512)

    # make padded dims divisible by the tiles
    Mp = _round_up(Mp, tm)
    Np = _round_up(Np, tn)
    Kp = _round_up(Kp, tk)

    # --- pad only when needed (avoid extra HBM copies) ---------------------
    if (Mp, Kp) != x2.shape:
        xp = jnp.zeros((Mp, Kp), x2.dtype).at[:B, :in_dim].set(x2)
    else:
        xp = x2
    if (Np, Kp) != weight.shape:
        wp = jnp.zeros((Np, Kp), weight.dtype).at[:out_dim, :in_dim].set(weight)
    else:
        wp = weight
    bp = (
        jnp.zeros((1, Np), jnp.float32)
        .at[0, :out_dim]
        .set(bias.astype(jnp.float32))
    )

    n_k = Kp // tk
    flops = 2 * Mp * Np * Kp
    bytes_accessed = 4 * (Mp * Kp + Np * Kp + Np + Mp * Np)
    cost = pl.CostEstimate(
        flops=flops, transcendentals=0, bytes_accessed=bytes_accessed
    )

    if n_k == 1:
        # ---- fast path: single K tile, no accumulator scratch ------------
        out_padded = pl.pallas_call(
            _linear_kernel_single_k,
            out_shape=jax.ShapeDtypeStruct((Mp, Np), x.dtype),
            grid_spec=pltpu.PrefetchScalarGridSpec(
                num_scalar_prefetch=0,
                grid=(Mp // tm, Np // tn),
                in_specs=[
                    pl.BlockSpec((tm, Kp), lambda i, j: (i, 0)),   # x
                    pl.BlockSpec((tn, Kp), lambda i, j: (j, 0)),   # W [out, in]
                    pl.BlockSpec((1, tn), lambda i, j: (0, j)),    # bias
                ],
                out_specs=pl.BlockSpec((tm, tn), lambda i, j: (i, j)),
            ),
            compiler_params=pltpu.CompilerParams(
                dimension_semantics=("parallel", "parallel"),
                vmem_limit_bytes=48 * 1024 * 1024,
            ),
            cost_estimate=cost,
        )(xp, wp, bp)
    else:
        # ---- general path: K-tiled reduction with f32 accumulator --------
        out_padded = pl.pallas_call(
            _linear_kernel_acc,
            out_shape=jax.ShapeDtypeStruct((Mp, Np), x.dtype),
            grid_spec=pltpu.PrefetchScalarGridSpec(
                num_scalar_prefetch=0,
                grid=(Mp // tm, Np // tn, n_k),
                in_specs=[
                    pl.BlockSpec((tm, tk), lambda i, j, k: (i, k)),   # x
                    pl.BlockSpec((tn, tk), lambda i, j, k: (j, k)),   # W [out, in]
                    pl.BlockSpec((1, tn), lambda i, j, k: (0, j)),    # bias
                ],
                out_specs=pl.BlockSpec((tm, tn), lambda i, j, k: (i, j)),
                scratch_shapes=[pltpu.VMEM((tm, tn), jnp.float32)],
            ),
            compiler_params=pltpu.CompilerParams(
                # M, N independent -> megacore sharding; K is the reduction.
                dimension_semantics=("parallel", "parallel", "arbitrary"),
                vmem_limit_bytes=48 * 1024 * 1024,
            ),
            cost_estimate=cost,
        )(xp, wp, bp)

    out = out_padded[:B, :out_dim]
    return out.reshape(lead_shape + (out_dim,))


if __name__ == "__main__":
    # Small shapes consistent with TestNet(in_dim, out_dim)
    B, in_dim, out_dim = 8, 32, 16

    key = jax.random.PRNGKey(0)
    kx, kw, kb = jax.random.split(key, 3)

    # Deterministic parameter init (mimics nn.Linear's uniform(-1/sqrt(in), 1/sqrt(in)))
    bound = 1.0 / jnp.sqrt(jnp.float32(in_dim))
    weight = jax.random.uniform(kw, (out_dim, in_dim), jnp.float32, -bound, bound)
    bias = jax.random.uniform(kb, (out_dim,), jnp.float32, -bound, bound)
    x = jax.random.normal(kx, (B, in_dim), jnp.float32)

    y = testnet_forward(x, weight, bias)
    jax.block_until_ready(y)

    # Sanity check against plain-JAX reference
    y_ref = x @ weight.T + bias
    assert y.shape == (B, out_dim)
    assert jnp.allclose(y, y_ref, atol=1e-5, rtol=1e-5)

    # Also exercise the K-tiled accumulator path with a larger contraction.
    B2, in2, out2 = 64, 768, 256
    k2x, k2w, k2b = jax.random.split(jax.random.PRNGKey(1), 3)
    w2 = jax.random.normal(k2w, (out2, in2), jnp.float32) * 0.02
    b2 = jax.random.normal(k2b, (out2,), jnp.float32) * 0.02
    x2 = jax.random.normal(k2x, (B2, in2), jnp.float32)
    y2 = testnet_forward(x2, w2, b2, tk=256)
    jax.block_until_ready(y2)
    y2_ref = x2 @ w2.T + b2
    assert jnp.allclose(y2, y2_ref, atol=1e-4, rtol=1e-4)

    print("KERNEL_OK")
</pallas_src>

<mosaic_0001>
module attributes {stable_mosaic.version = 11 : i64} {
  func.func @_linear_kernel_single_k(%arg0: i32, %arg1: i32, %arg2: memref<8x128xf32, #tpu.memory_space<vmem>>, %arg3: memref<128x128xf32, #tpu.memory_space<vmem>>, %arg4: memref<1x128xf32, #tpu.memory_space<vmem>>, %arg5: memref<8x128xf32, #tpu.memory_space<vmem>>) attributes {dimension_semantics = [#tpu.dimension_semantics<parallel>, #tpu.dimension_semantics<parallel>], iteration_bounds = array<i64: 1, 1>, scalar_prefetch = 0 : i64, scratch_operands = 0 : i64, tpu.core_type = #tpu.core_type<tc>, window_params = [{transform_indices = @transform_0, window_bounds = array<i64: 8, 128>}, {transform_indices = @transform_1, window_bounds = array<i64: 128, 128>}, {transform_indices = @transform_2, window_bounds = array<i64: 1, 128>}, {transform_indices = @transform_3, window_bounds = array<i64: 8, 128>}]} {
    %c0 = arith.constant 0 : index
    %c0_0 = arith.constant 0 : index
    %0 = vector.load %arg2[%c0, %c0_0] : memref<8x128xf32, #tpu.memory_space<vmem>>, vector<8x128xf32>
    %c0_1 = arith.constant 0 : index
    %c0_2 = arith.constant 0 : index
    %1 = vector.load %arg3[%c0_1, %c0_2] : memref<128x128xf32, #tpu.memory_space<vmem>>, vector<128x128xf32>
    %cst = arith.constant dense<0.000000e+00> : vector<8x128xf32>
    %2 = tpu.matmul %0, %1, %cst {dimension_numbers = #tpu.dot_dimension_numbers<[1], [1], [0], [0], [0, 0, 1, 0], [], []>} : vector<8x128xf32>, vector<128x128xf32>, vector<8x128xf32> -> vector<8x128xf32>
    %c0_3 = arith.constant 0 : index
    %c0_4 = arith.constant 0 : index
    %3 = vector.load %arg4[%c0_3, %c0_4] : memref<1x128xf32, #tpu.memory_space<vmem>>, vector<1x128xf32>
    %4 = vector.broadcast %3 : vector<1x128xf32> to vector<8x128xf32>
    %5 = arith.addf %2, %4 : vector<8x128xf32>
    %c0_5 = arith.constant 0 : index
    %c0_6 = arith.constant 0 : index
    %6 = vector.load %arg5[%c0_5, %c0_6] : memref<8x128xf32, #tpu.memory_space<vmem>>, vector<8x128xf32>
    tpu.vector_store %arg5[%c0_5, %c0_6], %5 {strides = array<i32>} : memref<8x128xf32, #tpu.memory_space<vmem>>, vector<8x128xf32>,
    return
  }
  func.func @transform_0(%arg0: i32, %arg1: i32) -> (i32, i32) {
    %c0_i32 = arith.constant 0 : i32
    %c0_i32_0 = arith.constant 0 : i32
    return %arg0, %c0_i32 : i32, i32
  }
  func.func @transform_1(%arg0: i32, %arg1: i32) -> (i32, i32) {
    %c0_i32 = arith.constant 0 : i32
    %c0_i32_0 = arith.constant 0 : i32
    return %arg1, %c0_i32 : i32, i32
  }
  func.func @transform_2(%arg0: i32, %arg1: i32) -> (i32, i32) {
    %c0_i32 = arith.constant 0 : i32
    %c0_i32_0 = arith.constant 0 : i32
    return %c0_i32, %arg1 : i32, i32
  }
  func.func @transform_3(%arg0: i32, %arg1: i32) -> (i32, i32) {
    %c0_i32 = arith.constant 0 : i32
    return %arg0, %arg1 : i32, i32
  }
}

</mosaic_0001>

<bundles_post_ra>
// kernel: testnet_forward.1
= control target key start
LH: loop header
LB: loop body
LE: loop exit
PB: predicated region body
PF: predicated region fallthrough
CT: control target
= control target key end

     0   :  { %s179_s0 = inlined_call_operand.vmem [shape: f32[8,128], index: 0, kind: input, shape index: {}]   ;;  %s180_s1 = inlined_call_operand.vmem [shape: f32[128,128], index: 1, kind: input, shape index: {}]   ;;  %s181_s2 = inlined_call_operand.vmem [shape: f32[1,128], index: 2, kind: input, shape index: {}]   ;;  %s182_s3 = inlined_call_operand.hbm [shape: f32[8,128], index: 3, kind: output, shape index: {}]  }
   0x1   :  { %v31_v0 = vld [vmem:[%s180_s1 + $0x78] sm:$0xff]  ;;  %v30_v1 = vld [vmem:[%s180_s1 + $0x70] sm:$0xff] }
   0x2   :  { %36 = vmatpush.xpose.msra.mxu0 %v31_v0 }
   0x3   :  { %8 = vsyncpa [#allocation3], 0  ;;  %v29_v2 = vld [vmem:[%s180_s1 + $0x68] sm:$0xff]  ;;  %v28_v3 = vld [vmem:[%s180_s1 + $0x60] sm:$0xff]  ;;  %s101_s21 = smov [#allocation2]   ;;  %s64_s25 = sshll.u32 %s182_s3, 4  ;;  %s65_s25 = int_to_ptr.hbm [resolvable:$true] %s64_s25 }
   0x4   :  { %v27_v4 = vld [vmem:[%s180_s1 + $0x58] sm:$0xff]  ;;  %v26_v5 = vld [vmem:[%s180_s1 + $0x50] sm:$0xff]  ;;  %v25_v6 = vld [vmem:[%s180_s1 + $0x48] sm:$0xff]  ;;  %s62_s22 = sshll.u32 %s101_s21, 4  ;;  %s63_s22 = int_to_ptr.vmem [resolvable:$true] %s62_s22 }
   0x5   :  { %v24_v7 = vld [vmem:[%s180_s1 + $0x40] sm:$0xff]  ;;  %v23_v8 = vld [vmem:[%s180_s1 + $0x38] sm:$0xff]  ;;  %v22_v9 = vld [vmem:[%s180_s1 + $0x30] sm:$0xff] }
   0x6   :  { %37 = vmatpush.xpose.msra.mxu0 %v30_v1  ;;  %v21_v10 = vld [vmem:[%s180_s1 + $0x28] sm:$0xff]  ;;  %v20_v11 = vld [vmem:[%s180_s1 + $0x20] sm:$0xff]  ;;  %v19_v12 = vld [vmem:[%s180_s1 + $0x18] sm:$0xff] }
   0x7   :  { %v18_v13 = vld [vmem:[%s180_s1 + $0x10] sm:$0xff]  ;;  %v17_v14 = vld [vmem:[%s180_s1 + $0x8] sm:$0xff]  ;;  %v16_v15 = vld [vmem:[%s180_s1] sm:$0xff] }
   0x8   :  { %v15_v16 = vld [vmem:[%s179_s0] sm:$0xff] }
   0x9   :  { %v74_v17 = vld [vmem:[%s181_s2] ss:$0 sm:$0xff] }
   0xa   :  { %38 = vmatpush.xpose.msra.mxu0 %v29_v2 }
   0xe   :  { %39 = vmatpush.xpose.msra.mxu0 %v28_v3 }
  0x12   :  { %40 = vmatpush.xpose.msra.mxu0 %v27_v4 }
  0x16   :  { %41 = vmatpush.xpose.msra.mxu0 %v26_v5 }
  0x1a   :  { %42 = vmatpush.xpose.msra.mxu0 %v25_v6 }
  0x1e   :  { %43 = vmatpush.xpose.msra.mxu0 %v24_v7 }
  0x22   :  { %44 = vmatpush.xpose.msra.mxu0 %v23_v8 }
  0x26   :  { %45 = vmatpush.xpose.msra.mxu0 %v22_v9 }
  0x2a   :  { %46 = vmatpush.xpose.msra.mxu0 %v21_v10 }
  0x2e   :  { %47 = vmatpush.xpose.msra.mxu0 %v20_v11 }
  0x32   :  { %48 = vmatpush.xpose.msra.mxu0 %v19_v12 }
  0x36   :  { %49 = vmatpush.xpose.msra.mxu0 %v18_v13 }
  0x3a   :  { %50 = vmatpush.xpose.msra.mxu0 %v17_v14 }
  0x3e   :  { %51 = vmatpush.xpose.msra.mxu0 %v16_v15 }
  0x41   :  { %52 = vmatmul.f32.vlgmr.msra.gmra.mxu0 %v15_v16 }
  0xbe   :  { %v53_v18 = vpop.f32.mrf.mxu0 }
  0xbf   :  { %v54_v19 = vadd.f32 %v74_v17, %v53_v18 }
  0xc1   :  { %56 = vst [vmem:[#allocation2] sm:$0xff] %v54_v19 }
  0xc2   :  { %67 = dma.vmem_to_hbm [thread:$0]  %s63_s22, 128, %s65_s25, [#allocation3]  }
  0xc3   :  { %99 = dma.done.wait [#allocation3], 128  }
  0xc4   :  { %100 = vsyncadd [#allocation3], 4294967168 }
  0xc5   :  { %72 = vsyncpa [#allocation3], 1 }

</bundles_post_ra>
